<compile_context>
chip_gen: v5e
topology: v5e:2x2
jax: 0.10.0
libtpu: 0.0.40
codegen_flags: <defaults>
</compile_context>

<pallas_src>
import math

import jax
import jax.numpy as jnp
import numpy as np
from jax import lax
from jax.experimental import pallas as pl
from jax.experimental.pallas import tpu as pltpu

NEG_INF = -1e30  # finite stand-in for -inf; exp() underflows to exactly 0


# ----------------------------------------------------------------------------- helpers
def _vmem_capacity_bytes():
    """Per-core VMEM capacity; conservative 64 MiB (v7x) if the query is unavailable."""
    try:
        info = pltpu.get_tpu_info()
        cap = getattr(info, "vmem_capacity_bytes", None)
        if cap:
            return int(cap)
    except Exception:
        pass
    return 64 * 2**20


def _step_vmem_bytes(tgt_t, src, E, csize, aw_size, kv_bufs=2):
    """Rough per-grid-step VMEM residency (assumes double buffering where applicable)."""
    q_b = 2 * tgt_t * E * csize                       # Q tile
    kv_b = kv_bufs * 2 * src * E * csize              # K and V blocks
    out_b = 2 * tgt_t * E * 4                         # f32 out tile
    aw_b = 2 * tgt_t * src * aw_size                  # attn-weight tile
    w_b = 2 * (E * E * csize + E * 4) + 2 * src * 4   # Wo^T, bo, pad bias
    tmp_b = 4 * tgt_t * src * 4 + 2 * tgt_t * E * 4   # f32 temporaries (bias/p/probs/aw_acc/out_acc)
    return q_b + kv_b + out_b + aw_b + w_b + tmp_b


def _pick_tgt_tile(tgt, src, E, csize, aw_size, budget):
    """Largest tgt tile that divides tgt and fits the generation-aware VMEM budget."""
    candidates = [t for t in (1024, 512, 256, 128, 64, 32, 16, 8) if t <= tgt and tgt % t == 0]
    for t in candidates:
        if _step_vmem_bytes(t, src, E, csize, aw_size) <= int(0.9 * budget):
            return t
    return candidates[-1] if candidates else tgt


def _spec(shape, index_map, *, single_buffer=False):
    """BlockSpec; optionally single-buffered (index constant across the inner grid axis)."""
    if single_buffer:
        try:
            return pl.BlockSpec(shape, index_map, pipeline_mode=pl.Buffered(1))
        except Exception:
            pass  # older jax without pipeline_mode / Buffered(1): fall back to default
    return pl.BlockSpec(shape, index_map)


# ------------------------------------------------------------------------------ kernel
def _make_kernel(tgt, src, tgt_t, H, hd, E, mask_curr_state):
    """Per-(batch, tgt-tile) kernel: masked per-head softmax attention + fused out-proj
    + head-averaged attention weights.  Q/K/V are already projected (XLA GEMMs)."""
    inv_H = 1.0 / H

    def kernel(q_ref, k_ref, v_ref, wo_ref, bo_ref, pad_ref, out_ref, aw_ref):
        dt = q_ref.dtype                 # MXU operand dtype (bf16 by default, f32 optional)
        ti = pl.program_id(1)

        q = q_ref[0]                     # (tgt_t, E)
        k = k_ref[0]                     # (src, E)
        v = v_ref[0]                     # (src, E)

        # Additive mask built in-kernel: key-padding bias + current-state band.
        # (Only a tiny (1, src) bias is DMA'd; no dense (tgt, src) mask from HBM.)
        bias = pad_ref[0]                # (1, src) f32, 0 / NEG_INF
        if mask_curr_state:
            row0 = ti * tgt_t
            rows = lax.broadcasted_iota(jnp.int32, (tgt_t, src), 0) + row0
            cols = lax.broadcasted_iota(jnp.int32, (tgt_t, src), 1)
            band = jnp.where((cols > rows + tgt) | (cols < rows),
                             jnp.float32(0.0), jnp.float32(NEG_INF))
            bias = bias + band           # (tgt_t, src); double NEG_INF is still finite in f32

        # NOTE: no q scaling - matches the reference forward (self.scaling is unused).
        aw_acc = None                    # raw probs summed over heads (1/H deferred)
        out_acc = None                   # (tgt_t, E) f32 output accumulator (lane-dense)
        for h in range(H):
            lo = h * hd
            q_h = q[:, lo:lo + hd]
            k_h = k[:, lo:lo + hd]
            v_h = v[:, lo:lo + hd]

            # QK^T via contraction on the head dim (no explicit transpose / XLU work)
            s = lax.dot_general(q_h, k_h, (((1,), (1,)), ((), ())),
                                preferred_element_type=jnp.float32)
            s = s + bias

            m = jnp.max(s, axis=-1, keepdims=True)
            p = jnp.exp(s - m)
            denom = jnp.sum(p, axis=-1, keepdims=True)
            probs = p * (1.0 / denom)    # exact normalize: probs are also a user-visible output
            # TODO(synk): dropout on probs omitted (p=0.0 / eval mode => identity)

            aw_acc = probs if aw_acc is None else aw_acc + probs

            attn_h = jnp.dot(probs.astype(dt), v_h,
                             preferred_element_type=jnp.float32)          # (tgt_t, hd)
            # Lane-dense per-head output projection (N = E); no masked sub-128 stores.
            o_h = jnp.dot(attn_h.astype(dt), wo_ref[lo:lo + hd, :],
                          preferred_element_type=jnp.float32)             # (tgt_t, E)
            out_acc = o_h if out_acc is None else out_acc + o_h

        out_ref[0] = (out_acc + bo_ref[...]).astype(out_ref.dtype)
        aw_ref[0] = (aw_acc * inv_H).astype(aw_ref.dtype)   # single deferred 1/H scale

    return kernel


# ----------------------------------------------------------------------------- wrapper
def bidirectional_mhsa(fwd_x, bwd_x, params, num_heads, key_padding_mask=None,
                       mask_curr_state=True, compute_dtype=jnp.bfloat16,
                       aw_dtype=jnp.float32):
    """fwd_x, bwd_x: (tgt_len, bsz, embed_dim)  (PyTorch Time x Batch x Channel).
    Returns (attn (tgt, bsz, E) f32, attn_weights (bsz, tgt, 2*tgt) aw_dtype)."""
    tgt, bsz, E = fwd_x.shape
    H = num_heads
    assert E % H == 0
    hd = E // H
    src = 2 * tgt
    f32 = jnp.float32
    cdt = compute_dtype

    in_w = params["in_proj_weight"].astype(f32)    # (3E, E)
    in_b = params["in_proj_bias"].astype(f32)      # (3E,)
    out_w = params["out_proj_weight"].astype(f32)  # (E, E)
    out_b = params["out_proj_bias"].astype(f32)    # (E,)

    # ---- build q / kv streams exactly as in the reference forward ----
    fx = fwd_x.astype(f32)
    bx = bwd_x.astype(f32)
    zeros = jnp.zeros((1, bsz, E), f32)
    q_in = jnp.concatenate([zeros, fx], axis=0)[:-1] + \
           jnp.concatenate([bx, zeros], axis=0)[1:]                  # (tgt, bsz, E)
    kv_in = jnp.concatenate([fx, bx], axis=0)                        # (src, bsz, E)

    # ---- hoisted in-projections: single full-width XLA GEMMs (not per tgt-tile) ----
    wq_t = in_w[:E].T.astype(cdt)
    wk_t = in_w[E:2 * E].T.astype(cdt)
    wv_t = in_w[2 * E:].T.astype(cdt)
    q_p = jnp.dot(q_in.astype(cdt), wq_t, preferred_element_type=f32) + in_b[:E]
    k_p = jnp.dot(kv_in.astype(cdt), wk_t, preferred_element_type=f32) + in_b[E:2 * E]
    v_p = jnp.dot(kv_in.astype(cdt), wv_t, preferred_element_type=f32) + in_b[2 * E:]
    q_p = jnp.transpose(q_p, (1, 0, 2)).astype(cdt)                  # (bsz, tgt, E)
    k_p = jnp.transpose(k_p, (1, 0, 2)).astype(cdt)                  # (bsz, src, E)
    v_p = jnp.transpose(v_p, (1, 0, 2)).astype(cdt)                  # (bsz, src, E)

    wo_t = out_w.T.astype(cdt)                                       # (E, E)
    bo = out_b.reshape(1, E)                                         # f32

    # ---- key-padding additive bias (tiny); current-state band is built in-kernel ----
    if key_padding_mask is not None:
        pad = jnp.tile(key_padding_mask.astype(bool), (1, 2))        # (bsz, src)
        pad_bias = jnp.where(pad, NEG_INF, 0.0).astype(f32)
    else:
        pad_bias = jnp.zeros((bsz, src), f32)
    pad_bias = pad_bias.reshape(bsz, 1, src)

    # ---- generation-aware VMEM budget and tgt tile (v7x: 64 MiB/TC, v5e/v6e: 128 MiB) ----
    csize = jnp.dtype(cdt).itemsize
    aw_size = jnp.dtype(aw_dtype).itemsize
    budget = int(0.85 * _vmem_capacity_bytes())
    tgt_t = _pick_tgt_tile(tgt, src, E, csize, aw_size, budget)
    n_tiles = tgt // tgt_t
    est = _step_vmem_bytes(tgt_t, src, E, csize, aw_size)
    vmem_limit = int(min(budget, max(32 * 2**20, int(1.3 * est))))

    kernel = _make_kernel(tgt, src, tgt_t, H, hd, E, mask_curr_state)

    out, aw = pl.pallas_call(
        kernel,
        out_shape=(jax.ShapeDtypeStruct((bsz, tgt, E), f32),
                   jax.ShapeDtypeStruct((bsz, tgt, src), aw_dtype)),
        grid=(bsz, n_tiles),
        in_specs=[
            pl.BlockSpec((1, tgt_t, E), lambda b, t: (b, t, 0)),                  # Q tile
            _spec((1, src, E), lambda b, t: (b, 0, 0), single_buffer=True),       # K (per batch)
            _spec((1, src, E), lambda b, t: (b, 0, 0), single_buffer=True),       # V (per batch)
            _spec((E, E), lambda b, t: (0, 0), single_buffer=True),               # Wo^T
            _spec((1, E), lambda b, t: (0, 0), single_buffer=True),               # bo
            pl.BlockSpec((1, 1, src), lambda b, t: (b, 0, 0)),                    # pad bias
        ],
        out_specs=(pl.BlockSpec((1, tgt_t, E), lambda b, t: (b, t, 0)),
                   pl.BlockSpec((1, tgt_t, src), lambda b, t: (b, t, 0))),
        compiler_params=pltpu.CompilerParams(
            dimension_semantics=("parallel", "parallel"),
            vmem_limit_bytes=vmem_limit),
    )(q_p, k_p, v_p, wo_t, bo, pad_bias)

    attn = jnp.transpose(out, (1, 0, 2))   # back to (tgt, bsz, E)
    return attn, aw


# --------------------------------------------------------------------- float64 reference
def reference_np(fwd_x, bwd_x, params, H, mask_curr_state=True, key_padding_mask=None):
    """NumPy float64 mirror of the PyTorch forward (precision-independent ground truth)."""
    fwd = np.asarray(fwd_x, np.float64)
    bwd = np.asarray(bwd_x, np.float64)
    tgt, bsz, E = fwd.shape
    hd = E // H
    src = 2 * tgt
    in_w = np.asarray(params["in_proj_weight"], np.float64)
    in_b = np.asarray(params["in_proj_bias"], np.float64)
    out_w = np.asarray(params["out_proj_weight"], np.float64)
    out_b = np.asarray(params["out_proj_bias"], np.float64)

    zeros = np.zeros((1, bsz, E))
    q = np.concatenate([zeros, fwd])[:-1] + np.concatenate([bwd, zeros])[1:]
    kv = np.concatenate([fwd, bwd], axis=0)
    q = q @ in_w[:E].T + in_b[:E]
    k = kv @ in_w[E:2 * E].T + in_b[E:2 * E]
    v = kv @ in_w[2 * E:].T + in_b[2 * E:]
    q = q.reshape(tgt, bsz * H, hd).transpose(1, 0, 2)
    k = k.reshape(src, bsz * H, hd).transpose(1, 0, 2)
    v = v.reshape(src, bsz * H, hd).transpose(1, 0, 2)

    aw = np.einsum('bth,bsh->bts', q, k)
    rows = np.arange(tgt)[:, None]
    cols = np.arange(src)[None, :]
    if mask_curr_state:
        aw = aw + np.where((cols > rows + tgt) | (cols < rows), 0.0, NEG_INF)[None]
    if key_padding_mask is not None:
        pad = np.tile(np.asarray(key_padding_mask, bool), (1, 2))    # (bsz, src)
        aw = aw.reshape(bsz, H, tgt, src) + np.where(pad, NEG_INF, 0.0)[:, None, None, :]
        aw = aw.reshape(bsz * H, tgt, src)
    m = aw.max(-1, keepdims=True)
    p = np.exp(aw - m)
    aw = p / p.sum(-1, keepdims=True)
    attn = np.einsum('bts,bsh->bth', aw, v)
    attn = attn.transpose(1, 0, 2).reshape(tgt, bsz, E)
    attn = attn @ out_w.T + out_b
    aw = aw.reshape(bsz, H, tgt, src).sum(1) / H
    return attn, aw


# --------------------------------------------------------------------------------- main
if __name__ == "__main__":
    tgt_len, bsz, embed_dim, num_heads = 8, 2, 32, 4

    key = jax.random.PRNGKey(0)
    k_w1, k_w2, k_f, k_b = jax.random.split(key, 4)

    # deterministic xavier-uniform-style init (shapes from module __init__)
    bound_in = math.sqrt(6.0 / (3 * embed_dim + embed_dim))
    bound_out = math.sqrt(6.0 / (embed_dim + embed_dim))
    params = {
        "in_proj_weight": jax.random.uniform(k_w1, (3 * embed_dim, embed_dim),
                                             jnp.float32, -bound_in, bound_in),
        "in_proj_bias": jnp.zeros((3 * embed_dim,), jnp.float32),
        "out_proj_weight": jax.random.uniform(k_w2, (embed_dim, embed_dim),
                                              jnp.float32, -bound_out, bound_out),
        "out_proj_bias": jnp.zeros((embed_dim,), jnp.float32),
    }

    fwd_x = jax.random.normal(k_f, (tgt_len, bsz, embed_dim), jnp.float32)
    bwd_x = jax.random.normal(k_b, (tgt_len, bsz, embed_dim), jnp.float32)

    ref_attn, ref_aw = reference_np(fwd_x, bwd_x,
                                    {k: np.asarray(v) for k, v in params.items()},
                                    num_heads)

    # Tolerances: the float64 NumPy reference is exact, but TPU matmuls (default
    # precision) use bf16 passes even for f32 operands, so 1e-3-level parity is not
    # achievable on hardware; these bounds still catch any structural error.
    # ---- default path: bf16 MXU operands, f32 softmax/accumulation ----
    attn, aw = bidirectional_mhsa(fwd_x, bwd_x, params, num_heads)
    attn, aw = jax.block_until_ready((attn, aw))
    assert attn.shape == (tgt_len, bsz, embed_dim)
    assert aw.shape == (bsz, tgt_len, 2 * tgt_len)
    assert np.allclose(np.asarray(attn, np.float64), ref_attn, atol=1e-1, rtol=1e-1)
    assert np.allclose(np.asarray(aw, np.float64), ref_aw, atol=5e-2, rtol=5e-2)

    # ---- f32-operand path (structural cross-check) ----
    attn32, aw32 = bidirectional_mhsa(fwd_x, bwd_x, params, num_heads,
                                      compute_dtype=jnp.float32)
    attn32, aw32 = jax.block_until_ready((attn32, aw32))
    assert np.allclose(np.asarray(attn32, np.float64), ref_attn, atol=1e-1, rtol=1e-1)
    assert np.allclose(np.asarray(aw32, np.float64), ref_aw, atol=5e-2, rtol=5e-2)

    print("KERNEL_OK")
</pallas_src>

<mosaic_0001>
module attributes {stable_mosaic.version = 11 : i64} {
  func.func @kernel(%arg0: i32, %arg1: i32, %arg2: memref<1x8x32xbf16, #tpu.memory_space<vmem>>, %arg3: memref<1x16x32xbf16, #tpu.memory_space<vmem>>, %arg4: memref<1x16x32xbf16, #tpu.memory_space<vmem>>, %arg5: memref<32x32xbf16, #tpu.memory_space<vmem>>, %arg6: memref<1x32xf32, #tpu.memory_space<vmem>>, %arg7: memref<1x1x16xf32, #tpu.memory_space<vmem>>, %arg8: memref<1x8x32xf32, #tpu.memory_space<vmem>>, %arg9: memref<1x8x16xf32, #tpu.memory_space<vmem>>) attributes {dimension_semantics = [#tpu.dimension_semantics<parallel>, #tpu.dimension_semantics<parallel>], iteration_bounds = array<i64: 2, 1>, scalar_prefetch = 0 : i64, scratch_operands = 0 : i64, tpu.core_type = #tpu.core_type<tc>, window_params = [{transform_indices = @transform_0, window_bounds = array<i64: 1, 8, 32>}, {pipeline_mode = #tpu.pipeline_mode<synchronous>, transform_indices = @transform_1, window_bounds = array<i64: 1, 16, 32>}, {pipeline_mode = #tpu.pipeline_mode<synchronous>, transform_indices = @transform_2, window_bounds = array<i64: 1, 16, 32>}, {pipeline_mode = #tpu.pipeline_mode<synchronous>, transform_indices = @transform_3, window_bounds = array<i64: 32, 32>}, {pipeline_mode = #tpu.pipeline_mode<synchronous>, transform_indices = @transform_4, window_bounds = array<i64: 1, 32>}, {transform_indices = @transform_5, window_bounds = array<i64: 1, 1, 16>}, {transform_indices = @transform_6, window_bounds = array<i64: 1, 8, 32>}, {transform_indices = @transform_7, window_bounds = array<i64: 1, 8, 16>}]} {
    %c0 = arith.constant 0 : index
    %c0_0 = arith.constant 0 : index
    %c0_1 = arith.constant 0 : index
    %0 = vector.load %arg2[%c0, %c0_0, %c0_1] : memref<1x8x32xbf16, #tpu.memory_space<vmem>>, vector<1x8x32xbf16>
    %1 = vector.shape_cast %0 : vector<1x8x32xbf16> to vector<8x32xbf16>
    %c0_2 = arith.constant 0 : index
    %c0_3 = arith.constant 0 : index
    %c0_4 = arith.constant 0 : index
    %2 = vector.load %arg3[%c0_2, %c0_3, %c0_4] : memref<1x16x32xbf16, #tpu.memory_space<vmem>>, vector<1x16x32xbf16>
    %3 = vector.shape_cast %2 : vector<1x16x32xbf16> to vector<16x32xbf16>
    %c0_5 = arith.constant 0 : index
    %c0_6 = arith.constant 0 : index
    %c0_7 = arith.constant 0 : index
    %4 = vector.load %arg4[%c0_5, %c0_6, %c0_7] : memref<1x16x32xbf16, #tpu.memory_space<vmem>>, vector<1x16x32xbf16>
    %5 = vector.shape_cast %4 : vector<1x16x32xbf16> to vector<16x32xbf16>
    %c0_8 = arith.constant 0 : index
    %c0_9 = arith.constant 0 : index
    %c0_10 = arith.constant 0 : index
    %6 = vector.load %arg7[%c0_8, %c0_9, %c0_10] : memref<1x1x16xf32, #tpu.memory_space<vmem>>, vector<1x1x16xf32>
    %7 = vector.shape_cast %6 : vector<1x1x16xf32> to vector<1x16xf32>
    %c8_i32 = arith.constant 8 : i32
    %8 = arith.muli %arg1, %c8_i32 : i32
    %9 = tpu.iota {dimensions = array<i32: 0>} : vector<8x16xi32>
    %10 = vector.broadcast %8 : i32 to vector<8x16xi32>
    %11 = arith.addi %9, %10 : vector<8x16xi32>
    %12 = tpu.iota {dimensions = array<i32: 1>} : vector<8x16xi32>
    %c8_i32_11 = arith.constant 8 : i32
    %13 = vector.broadcast %c8_i32_11 : i32 to vector<8x16xi32>
    %14 = arith.addi %11, %13 : vector<8x16xi32>
    %15 = arith.cmpi sgt, %12, %14 : vector<8x16xi32>
    %16 = arith.cmpi slt, %12, %11 : vector<8x16xi32>
    %17 = arith.ori %15, %16 : vector<8x16xi1>
    %cst = arith.constant 0.000000e+00 : f32
    %cst_12 = arith.constant -1.000000e+30 : f32
    %18 = vector.broadcast %cst : f32 to vector<8x16xf32>
    %19 = vector.broadcast %cst_12 : f32 to vector<8x16xf32>
    %20 = arith.select %17, %18, %19 : vector<8x16xi1>, vector<8x16xf32>
    %21 = vector.broadcast %7 : vector<1x16xf32> to vector<8x16xf32>
    %22 = arith.addf %21, %20 : vector<8x16xf32>
    %23 = vector.extract_strided_slice %1 {offsets = [0, 0], sizes = [8, 8], strides = [1, 1]} : vector<8x32xbf16> to vector<8x8xbf16>
    %24 = vector.extract_strided_slice %3 {offsets = [0, 0], sizes = [16, 8], strides = [1, 1]} : vector<16x32xbf16> to vector<16x8xbf16>
    %25 = vector.extract_strided_slice %5 {offsets = [0, 0], sizes = [16, 8], strides = [1, 1]} : vector<16x32xbf16> to vector<16x8xbf16>
    %cst_13 = arith.constant dense<0.000000e+00> : vector<8x16xf32>
    %26 = tpu.matmul %23, %24, %cst_13 {dimension_numbers = #tpu.dot_dimension_numbers<[1], [1], [0], [0], [0, 0, 1, 0], [], []>} : vector<8x8xbf16>, vector<16x8xbf16>, vector<8x16xf32> -> vector<8x16xf32>
    %27 = arith.addf %26, %22 : vector<8x16xf32>
    %cst_14 = arith.constant dense<0xFF800000> : vector<8xf32>
    %28 = vector.multi_reduction <maximumf>, %27, %cst_14 [1] : vector<8x16xf32> to vector<8xf32>
    %29 = vector.shape_cast %28 : vector<8xf32> to vector<8x1xf32>
    %30 = vector.broadcast %29 : vector<8x1xf32> to vector<8x16xf32>
    %31 = arith.subf %27, %30 : vector<8x16xf32>
    %32 = math.exp %31 : vector<8x16xf32>
    %cst_15 = arith.constant dense<0.000000e+00> : vector<8xf32>
    %33 = vector.multi_reduction <add>, %32, %cst_15 [1] : vector<8x16xf32> to vector<8xf32>
    %34 = vector.shape_cast %33 : vector<8xf32> to vector<8x1xf32>
    %cst_16 = arith.constant 1.000000e+00 : f32
    %35 = vector.broadcast %cst_16 : f32 to vector<8x1xf32>
    %36 = arith.divf %35, %34 : vector<8x1xf32>
    %37 = vector.broadcast %36 : vector<8x1xf32> to vector<8x16xf32>
    %38 = arith.mulf %32, %37 : vector<8x16xf32>
    %39 = arith.truncf %38 : vector<8x16xf32> to vector<8x16xbf16>
    %cst_17 = arith.constant dense<0.000000e+00> : vector<8x8xf32>
    %40 = tpu.matmul %39, %25, %cst_17 {dimension_numbers = #tpu.dot_dimension_numbers<[1], [0], [0], [1], [0, 0, 1, 1], [], []>} : vector<8x16xbf16>, vector<16x8xbf16>, vector<8x8xf32> -> vector<8x8xf32>
    %41 = arith.truncf %40 : vector<8x8xf32> to vector<8x8xbf16>
    %c0_18 = arith.constant 0 : index
    %c0_19 = arith.constant 0 : index
    %42 = vector.load %arg5[%c0_18, %c0_19] : memref<32x32xbf16, #tpu.memory_space<vmem>>, vector<8x32xbf16>
    %cst_20 = arith.constant dense<0.000000e+00> : vector<8x32xf32>
    %43 = tpu.matmul %41, %42, %cst_20 {dimension_numbers = #tpu.dot_dimension_numbers<[1], [0], [0], [1], [0, 0, 1, 1], [], []>} : vector<8x8xbf16>, vector<8x32xbf16>, vector<8x32xf32> -> vector<8x32xf32>
    %44 = vector.extract_strided_slice %1 {offsets = [0, 8], sizes = [8, 8], strides = [1, 1]} : vector<8x32xbf16> to vector<8x8xbf16>
    %45 = vector.extract_strided_slice %3 {offsets = [0, 8], sizes = [16, 8], strides = [1, 1]} : vector<16x32xbf16> to vector<16x8xbf16>
    %46 = vector.extract_strided_slice %5 {offsets = [0, 8], sizes = [16, 8], strides = [1, 1]} : vector<16x32xbf16> to vector<16x8xbf16>
    %cst_21 = arith.constant dense<0.000000e+00> : vector<8x16xf32>
    %47 = tpu.matmul %44, %45, %cst_21 {dimension_numbers = #tpu.dot_dimension_numbers<[1], [1], [0], [0], [0, 0, 1, 0], [], []>} : vector<8x8xbf16>, vector<16x8xbf16>, vector<8x16xf32> -> vector<8x16xf32>
    %48 = arith.addf %47, %22 : vector<8x16xf32>
    %cst_22 = arith.constant dense<0xFF800000> : vector<8xf32>
    %49 = vector.multi_reduction <maximumf>, %48, %cst_22 [1] : vector<8x16xf32> to vector<8xf32>
    %50 = vector.shape_cast %49 : vector<8xf32> to vector<8x1xf32>
    %51 = vector.broadcast %50 : vector<8x1xf32> to vector<8x16xf32>
    %52 = arith.subf %48, %51 : vector<8x16xf32>
    %53 = math.exp %52 : vector<8x16xf32>
    %cst_23 = arith.constant dense<0.000000e+00> : vector<8xf32>
    %54 = vector.multi_reduction <add>, %53, %cst_23 [1] : vector<8x16xf32> to vector<8xf32>
    %55 = vector.shape_cast %54 : vector<8xf32> to vector<8x1xf32>
    %cst_24 = arith.constant 1.000000e+00 : f32
    %56 = vector.broadcast %cst_24 : f32 to vector<8x1xf32>
    %57 = arith.divf %56, %55 : vector<8x1xf32>
    %58 = vector.broadcast %57 : vector<8x1xf32> to vector<8x16xf32>
    %59 = arith.mulf %53, %58 : vector<8x16xf32>
    %60 = arith.addf %38, %59 : vector<8x16xf32>
    %61 = arith.truncf %59 : vector<8x16xf32> to vector<8x16xbf16>
    %cst_25 = arith.constant dense<0.000000e+00> : vector<8x8xf32>
    %62 = tpu.matmul %61, %46, %cst_25 {dimension_numbers = #tpu.dot_dimension_numbers<[1], [0], [0], [1], [0, 0, 1, 1], [], []>} : vector<8x16xbf16>, vector<16x8xbf16>, vector<8x8xf32> -> vector<8x8xf32>
    %63 = arith.truncf %62 : vector<8x8xf32> to vector<8x8xbf16>
    %c8 = arith.constant 8 : index
    %c0_26 = arith.constant 0 : index
    %64 = vector.load %arg5[%c8, %c0_26] : memref<32x32xbf16, #tpu.memory_space<vmem>>, vector<8x32xbf16>
    %cst_27 = arith.constant dense<0.000000e+00> : vector<8x32xf32>
    %65 = tpu.matmul %63, %64, %cst_27 {dimension_numbers = #tpu.dot_dimension_numbers<[1], [0], [0], [1], [0, 0, 1, 1], [], []>} : vector<8x8xbf16>, vector<8x32xbf16>, vector<8x32xf32> -> vector<8x32xf32>
    %66 = arith.addf %43, %65 : vector<8x32xf32>
    %67 = vector.extract_strided_slice %1 {offsets = [0, 16], sizes = [8, 8], strides = [1, 1]} : vector<8x32xbf16> to vector<8x8xbf16>
    %68 = vector.extract_strided_slice %3 {offsets = [0, 16], sizes = [16, 8], strides = [1, 1]} : vector<16x32xbf16> to vector<16x8xbf16>
    %69 = vector.extract_strided_slice %5 {offsets = [0, 16], sizes = [16, 8], strides = [1, 1]} : vector<16x32xbf16> to vector<16x8xbf16>
    %cst_28 = arith.constant dense<0.000000e+00> : vector<8x16xf32>
    %70 = tpu.matmul %67, %68, %cst_28 {dimension_numbers = #tpu.dot_dimension_numbers<[1], [1], [0], [0], [0, 0, 1, 0], [], []>} : vector<8x8xbf16>, vector<16x8xbf16>, vector<8x16xf32> -> vector<8x16xf32>
    %71 = arith.addf %70, %22 : vector<8x16xf32>
    %cst_29 = arith.constant dense<0xFF800000> : vector<8xf32>
    %72 = vector.multi_reduction <maximumf>, %71, %cst_29 [1] : vector<8x16xf32> to vector<8xf32>
    %73 = vector.shape_cast %72 : vector<8xf32> to vector<8x1xf32>
    %74 = vector.broadcast %73 : vector<8x1xf32> to vector<8x16xf32>
    %75 = arith.subf %71, %74 : vector<8x16xf32>
    %76 = math.exp %75 : vector<8x16xf32>
    %cst_30 = arith.constant dense<0.000000e+00> : vector<8xf32>
    %77 = vector.multi_reduction <add>, %76, %cst_30 [1] : vector<8x16xf32> to vector<8xf32>
    %78 = vector.shape_cast %77 : vector<8xf32> to vector<8x1xf32>
    %cst_31 = arith.constant 1.000000e+00 : f32
    %79 = vector.broadcast %cst_31 : f32 to vector<8x1xf32>
    %80 = arith.divf %79, %78 : vector<8x1xf32>
    %81 = vector.broadcast %80 : vector<8x1xf32> to vector<8x16xf32>
    %82 = arith.mulf %76, %81 : vector<8x16xf32>
    %83 = arith.addf %60, %82 : vector<8x16xf32>
    %84 = arith.truncf %82 : vector<8x16xf32> to vector<8x16xbf16>
    %cst_32 = arith.constant dense<0.000000e+00> : vector<8x8xf32>
    %85 = tpu.matmul %84, %69, %cst_32 {dimension_numbers = #tpu.dot_dimension_numbers<[1], [0], [0], [1], [0, 0, 1, 1], [], []>} : vector<8x16xbf16>, vector<16x8xbf16>, vector<8x8xf32> -> vector<8x8xf32>
    %86 = arith.truncf %85 : vector<8x8xf32> to vector<8x8xbf16>
    %c16 = arith.constant 16 : index
    %c0_33 = arith.constant 0 : index
    %87 = vector.load %arg5[%c16, %c0_33] : memref<32x32xbf16, #tpu.memory_space<vmem>>, vector<8x32xbf16>
    %cst_34 = arith.constant dense<0.000000e+00> : vector<8x32xf32>
    %88 = tpu.matmul %86, %87, %cst_34 {dimension_numbers = #tpu.dot_dimension_numbers<[1], [0], [0], [1], [0, 0, 1, 1], [], []>} : vector<8x8xbf16>, vector<8x32xbf16>, vector<8x32xf32> -> vector<8x32xf32>
    %89 = arith.addf %66, %88 : vector<8x32xf32>
    %90 = vector.extract_strided_slice %1 {offsets = [0, 24], sizes = [8, 8], strides = [1, 1]} : vector<8x32xbf16> to vector<8x8xbf16>
    %91 = vector.extract_strided_slice %3 {offsets = [0, 24], sizes = [16, 8], strides = [1, 1]} : vector<16x32xbf16> to vector<16x8xbf16>
    %92 = vector.extract_strided_slice %5 {offsets = [0, 24], sizes = [16, 8], strides = [1, 1]} : vector<16x32xbf16> to vector<16x8xbf16>
    %cst_35 = arith.constant dense<0.000000e+00> : vector<8x16xf32>
    %93 = tpu.matmul %90, %91, %cst_35 {dimension_numbers = #tpu.dot_dimension_numbers<[1], [1], [0], [0], [0, 0, 1, 0], [], []>} : vector<8x8xbf16>, vector<16x8xbf16>, vector<8x16xf32> -> vector<8x16xf32>
    %94 = arith.addf %93, %22 : vector<8x16xf32>
    %cst_36 = arith.constant dense<0xFF800000> : vector<8xf32>
    %95 = vector.multi_reduction <maximumf>, %94, %cst_36 [1] : vector<8x16xf32> to vector<8xf32>
    %96 = vector.shape_cast %95 : vector<8xf32> to vector<8x1xf32>
    %97 = vector.broadcast %96 : vector<8x1xf32> to vector<8x16xf32>
    %98 = arith.subf %94, %97 : vector<8x16xf32>
    %99 = math.exp %98 : vector<8x16xf32>
    %cst_37 = arith.constant dense<0.000000e+00> : vector<8xf32>
    %100 = vector.multi_reduction <add>, %99, %cst_37 [1] : vector<8x16xf32> to vector<8xf32>
    %101 = vector.shape_cast %100 : vector<8xf32> to vector<8x1xf32>
    %cst_38 = arith.constant 1.000000e+00 : f32
    %102 = vector.broadcast %cst_38 : f32 to vector<8x1xf32>
    %103 = arith.divf %102, %101 : vector<8x1xf32>
    %104 = vector.broadcast %103 : vector<8x1xf32> to vector<8x16xf32>
    %105 = arith.mulf %99, %104 : vector<8x16xf32>
    %106 = arith.addf %83, %105 : vector<8x16xf32>
    %107 = arith.truncf %105 : vector<8x16xf32> to vector<8x16xbf16>
    %cst_39 = arith.constant dense<0.000000e+00> : vector<8x8xf32>
    %108 = tpu.matmul %107, %92, %cst_39 {dimension_numbers = #tpu.dot_dimension_numbers<[1], [0], [0], [1], [0, 0, 1, 1], [], []>} : vector<8x16xbf16>, vector<16x8xbf16>, vector<8x8xf32> -> vector<8x8xf32>
    %109 = arith.truncf %108 : vector<8x8xf32> to vector<8x8xbf16>
    %c24 = arith.constant 24 : index
    %c0_40 = arith.constant 0 : index
    %110 = vector.load %arg5[%c24, %c0_40] : memref<32x32xbf16, #tpu.memory_space<vmem>>, vector<8x32xbf16>
    %cst_41 = arith.constant dense<0.000000e+00> : vector<8x32xf32>
    %111 = tpu.matmul %109, %110, %cst_41 {dimension_numbers = #tpu.dot_dimension_numbers<[1], [0], [0], [1], [0, 0, 1, 1], [], []>} : vector<8x8xbf16>, vector<8x32xbf16>, vector<8x32xf32> -> vector<8x32xf32>
    %112 = arith.addf %89, %111 : vector<8x32xf32>
    %c0_42 = arith.constant 0 : index
    %c0_43 = arith.constant 0 : index
    %113 = vector.load %arg6[%c0_42, %c0_43] : memref<1x32xf32, #tpu.memory_space<vmem>>, vector<1x32xf32>
    %114 = vector.broadcast %113 : vector<1x32xf32> to vector<8x32xf32>
    %115 = arith.addf %112, %114 : vector<8x32xf32>
    %c0_44 = arith.constant 0 : index
    %c0_45 = arith.constant 0 : index
    %c0_46 = arith.constant 0 : index
    %116 = vector.load %arg8[%c0_44, %c0_45, %c0_46] : memref<1x8x32xf32, #tpu.memory_space<vmem>>, vector<1x8x32xf32>
    %117 = vector.shape_cast %116 : vector<1x8x32xf32> to vector<8x32xf32>
    %118 = vector.shape_cast %115 : vector<8x32xf32> to vector<1x8x32xf32>
    tpu.vector_store %arg8[%c0_44, %c0_45, %c0_46], %118 {strides = array<i32>} : memref<1x8x32xf32, #tpu.memory_space<vmem>>, vector<1x8x32xf32>,
    %cst_47 = arith.constant 2.500000e-01 : f32
    %119 = vector.broadcast %cst_47 : f32 to vector<8x16xf32>
    %120 = arith.mulf %106, %119 : vector<8x16xf32>
    %c0_48 = arith.constant 0 : index
    %c0_49 = arith.constant 0 : index
    %c0_50 = arith.constant 0 : index
    %121 = vector.load %arg9[%c0_48, %c0_49, %c0_50] : memref<1x8x16xf32, #tpu.memory_space<vmem>>, vector<1x8x16xf32>
    %122 = vector.shape_cast %121 : vector<1x8x16xf32> to vector<8x16xf32>
    %123 = vector.shape_cast %120 : vector<8x16xf32> to vector<1x8x16xf32>
    tpu.vector_store %arg9[%c0_48, %c0_49, %c0_50], %123 {strides = array<i32>} : memref<1x8x16xf32, #tpu.memory_space<vmem>>, vector<1x8x16xf32>,
    return
  }
  func.func @transform_0(%arg0: i32, %arg1: i32) -> (i32, i32, i32) {
    %c0_i32 = arith.constant 0 : i32
    %c0_i32_0 = arith.constant 0 : i32
    return %arg0, %arg1, %c0_i32 : i32, i32, i32
  }
  func.func @transform_1(%arg0: i32, %arg1: i32) -> (i32, i32, i32) {
    %c0_i32 = arith.constant 0 : i32
    %c0_i32_0 = arith.constant 0 : i32
    %c0_i32_1 = arith.constant 0 : i32
    return %arg0, %c0_i32, %c0_i32_0 : i32, i32, i32
  }
  func.func @transform_2(%arg0: i32, %arg1: i32) -> (i32, i32, i32) {
    %c0_i32 = arith.constant 0 : i32
    %c0_i32_0 = arith.constant 0 : i32
    %c0_i32_1 = arith.constant 0 : i32
    return %arg0, %c0_i32, %c0_i32_0 : i32, i32, i32
  }
  func.func @transform_3(%arg0: i32, %arg1: i32) -> (i32, i32) {
    %c0_i32 = arith.constant 0 : i32
    %c0_i32_0 = arith.constant 0 : i32
    %c0_i32_1 = arith.constant 0 : i32
    return %c0_i32, %c0_i32_0 : i32, i32
  }
  func.func @transform_4(%arg0: i32, %arg1: i32) -> (i32, i32) {
    %c0_i32 = arith.constant 0 : i32
    %c0_i32_0 = arith.constant 0 : i32
    %c0_i32_1 = arith.constant 0 : i32
    return %c0_i32, %c0_i32_0 : i32, i32
  }
  func.func @transform_5(%arg0: i32, %arg1: i32) -> (i32, i32, i32) {
    %c0_i32 = arith.constant 0 : i32
    %c0_i32_0 = arith.constant 0 : i32
    %c0_i32_1 = arith.constant 0 : i32
    return %arg0, %c0_i32, %c0_i32_0 : i32, i32, i32
  }
  func.func @transform_6(%arg0: i32, %arg1: i32) -> (i32, i32, i32) {
    %c0_i32 = arith.constant 0 : i32
    %c0_i32_0 = arith.constant 0 : i32
    return %arg0, %arg1, %c0_i32 : i32, i32, i32
  }
  func.func @transform_7(%arg0: i32, %arg1: i32) -> (i32, i32, i32) {
    %c0_i32 = arith.constant 0 : i32
    %c0_i32_0 = arith.constant 0 : i32
    return %arg0, %arg1, %c0_i32 : i32, i32, i32
  }
}

</mosaic_0001>

<bundles_post_ra>
// kernel: tpu_custom_call.1
= control target key start
LH: loop header
LB: loop body
LE: loop exit
PB: predicated region body
PF: predicated region fallthrough
CT: control target
= control target key end

     0   :  { %s1761_s0 = inlined_call_operand.hbm [shape: bf16[2,8,32], index: 0, kind: input, shape index: {}]   ;;  %s1762_s1 = inlined_call_operand.hbm [shape: bf16[2,16,32], index: 1, kind: input, shape index: {}]   ;;  %s1763_s2 = inlined_call_operand.hbm [shape: bf16[2,16,32], index: 2, kind: input, shape index: {}]   ;;  %s1764_s3 = inlined_call_operand.hbm [shape: bf16[32,32], index: 3, kind: input, shape index: {}]   ;;  %s1765_s4 = inlined_call_operand.vmem [shape: f32[1,32], index: 4, kind: input, shape index: {}]   ;;  %s1766_s5 = inlined_call_operand.vmem [shape: f32[2,1,16], index: 5, kind: input, shape index: {}]   ;;  %s1767_s6 = inlined_call_operand.hbm [shape: f32[2,8,32], index: 6, kind: output, shape index: {0}]   ;;  %s1768_s7 = inlined_call_operand.hbm [shape: f32[2,8,16], index: 7, kind: output, shape index: {1}]  }
   0x1   :  { %1773 = sst [smem:[#allocation19_spill]] %s1762_s1 }
   0x2   :  { %1774 = sst [smem:[#allocation20_spill]] %s1763_s2 }
   0x3   :  { %13 = vsyncpa [#allocation3], 0 }
   0x4   :  { %15 = vsyncpa [#allocation3 + $0x1], 0 }
   0x5   :  { %16 = vsyncpa [#allocation6], 0 }
   0x6   :  { %17 = vsyncpa [#allocation9], 0 }
   0x7   :  { %18 = vsyncpa [#allocation4], 0 }
   0x8   :  { %20 = vsyncpa [#allocation4 + $0x1], 0 }
   0x9   :  { %21 = vsyncpa [#allocation12], 0 }
   0xa   :  { %23 = vsyncpa [#allocation12 + $0x1], 0  ;;  %s1455_s24 = smov 0   ;;  %s1457_s25 = smov 0  }
   0xb   :  { %s1459_s26 = smov 0   ;;  %s1461_s27 = smov 0  }
   0xc   :  { %s1463_s28 = smov 0   ;;  %s1465_s29 = smov 0  }
   0xd LB: > { %s1769_s30 = sadd.s32 4294967295, %s1404_s29   ;;  %s1003_s8 = sadd.s32 4294967294, %s1404_s29   ;;  %s1404_s29 = sphi %s1465_s29, %s29_s29   ;;  %s1400_s28 = sphi %s1463_s28, %s1792_s28   ;;  %s1396_s27 = sphi %s1461_s27, %s1791_s27   ;;  %s1392_s26 = sphi %s1459_s26, %s1790_s26   ;;  %s1388_s25 = sphi %s1457_s25, %s1789_s25   ;;  %s1384_s24 = sphi %s1455_s24, %s1788_s24  }
   0xe   : > { %p63_p0 = scmp.ne.s32.totalorder %s1388_s25, %s1384_s24  ;;  %p1491_p1 = scmp.eq.s32.totalorder %s1769_s30, 0 }
   0xf   : > { %p215_p2 = scmp.eq.s32.totalorder %s1003_s8, 1  ;;  %p1004_p3 = scmp.ge.s32.totalorder %s1404_s29, 1 }
  0x10   : > { %p1498_p4 = por %p1491_p1, %p63_p0  ;;  %p250_p5 = scmp.lt.s32.totalorder %s1404_s29, 3 }
  0x11   : > { %p1503_p6 = por %p215_p2, %p63_p0  ;;  %s1508_s12 = sshll.u32 %s1396_s27, 3 }
  0x12   : > { %p1510_p7 = pnand %p1004_p3, %p250_p5  ;;  %s1780_s1 = sld [smem:[#allocation19_spill]] }
  0x13   : > { %s1777_s11 = scalar_select %p1503_p6, 1, 0 }
  0x14   : > { %p1062_p8 = pneg %p1510_p7  ;;  %s1406_s18 = smov [#allocation5]  }
  0x15   : > { %1778 = sst [smem:[#allocation18_spill]] %s1777_s11  ;;  %s266_s19 = sshll.u32 %s1406_s18, 4  ;;  %s267_s19 = int_to_ptr.vmem [resolvable:$true] %s266_s19 }
  0x16   : > { %p1525_p9 = pnand %p1062_p8, %p1498_p4  ;;  %s1782_s2 = sld [smem:[#allocation20_spill]] }
  0x18   : > { %s263_s16 = scalar_lea.hbm %s1780_s1, %s1508_s12  ;;  %p1166_p11 = pneg %p1525_p9 }
  0x19   : > { %s264_s17 = sshll.u32 %s263_s16, 4  ;;  %s1169_s30 = scalar_lea.hbm %s1780_s1, 16  ;;  %s265_s17 = int_to_ptr.hbm [resolvable:$true] %s264_s17 }
  0x1a   : > { %s1162_s14 = sshra.s32 %s265_s17, 4  ;;  %s1163_s14 = int_to_ptr.hbm [resolvable:$true] %s1162_s14 }
  0x1b   : > { %s1164_s15 = scalar_lea.hbm %s1163_s14, 8  ;;  %p1170_p0 = scmp.lt.s32.totalorder %s1163_s14, %s1780_s1 }
  0x1c   : > { %s280_s23 = scalar_lea.hbm %s1782_s2, %s1508_s12  ;;  %p1165_p10 = scmp.ne.s32.totalorder %s1163_s14, %s1164_s15 }
  0x1d   : > { %s1533_s8 = sshll.u32 %s280_s23, 4  ;;  %p1171_p2 = scmp.lt.s32.totalorder %s1169_s30, %s1164_s15  ;;  %s282_s8 = int_to_ptr.hbm [resolvable:$true] %s1533_s8 }
  0x1e   : > { %p1167_p12 = pnand %p1166_p11, %p1165_p10 }
  0x1f   : > { %p1172_p3 = por %p1171_p2, %p1170_p0 }
  0x20   : > { %p1168_p13 = pneg %p1167_p12 }
  0x22   : > { %p1173_p5 = pnand %p1172_p3, %p1168_p13 }
  0x24   : > { %1176 = shalt.err (!%p1173_p5)
}
  0x25   : > { %s1771_s23 = smov 64   ;;  %s1408_s11 = smov 4  }
  0x26   : > { %1065 = dma.hbm_to_vmem [thread:$0]  (!%p1525_p9), %s265_s17, 128, %s267_s19, [#allocation6], %s1771_s23, %s1771_s23, %s1408_s11  }
  0x27   : > { %s1409_s16 = smov [#allocation7]   ;;  %s295_s15 = sshll.u32 %s1764_s3, 4  ;;  %s296_s15 = int_to_ptr.hbm [resolvable:$true] %s295_s15 }
  0x28   : > { %s283_s18 = sshll.u32 %s1409_s16, 4  ;;  %s1192_s21 = sshra.s32 %s282_s8, 4  ;;  %s284_s18 = int_to_ptr.vmem [resolvable:$true] %s283_s18  ;;  %s1193_s21 = int_to_ptr.hbm [resolvable:$true] %s1192_s21 }
  0x29   : > { %s1194_s22 = scalar_lea.hbm %s1193_s21, 8  ;;  %s1199_s19 = scalar_lea.hbm %s1782_s2, 16 }
  0x2a   : > { %p1195_p12 = scmp.ne.s32.totalorder %s1193_s21, %s1194_s22  ;;  %p1200_p2 = scmp.lt.s32.totalorder %s1193_s21, %s1782_s2 }
  0x2b   : > { %p1201_p3 = scmp.lt.s32.totalorder %s1199_s19, %s1194_s22 }
  0x2c   : > { %p1197_p13 = pnand %p1195_p12, %p1166_p11 }
  0x2d   : > { %p1202_p5 = por %p1201_p3, %p1200_p2 }
  0x2e   : > { %p1198_p0 = pneg %p1197_p13 }
  0x30   : > { %p1203_p10 = pnand %p1202_p5, %p1198_p0 }
  0x32   : > { %1206 = shalt.err (!%p1203_p10)
}
  0x33   : > { %s1783_s14 = smov 64   ;;  %p1069_p11 = pnand %p1062_p8, %p1491_p1 }
  0x34   : > { %1068 = dma.hbm_to_vmem [thread:$0]  (!%p1525_p9), %s282_s8, 128, %s284_s18, [#allocation6], %s1783_s14, %s1783_s14, %s1408_s11  }
  0x35   : > { %s1410_s1 = smov [#allocation8]   ;;  %s41_s23 = sadd.s32 1, %s1400_s28 }
  0x36   : > { %s297_s20 = sshll.u32 %s1410_s1, 4  ;;  %s50_s30 = sadd.s32 1, %s1392_s26  ;;  %s298_s20 = int_to_ptr.vmem [resolvable:$true] %s297_s20 }
  0x37   : > { %1071 = dma.hbm_to_vmem [thread:$0]  (!%p1069_p11), %s296_s15, 256, %s298_s20, [#allocation9], %s1783_s14, %s1783_s14, %s1408_s11  }
  0x38   : > { %p43_p10 = scmp.ge.s32.totalorder %s41_s23, 2  ;;  %p57_p12 = scmp.ne.s32.totalorder %s1392_s26, %s1388_s25 }
  0x39   : > { %p58_p13 = scmp.eq.s32.totalorder %s1404_s29, 0  ;;  %s1784_s8 = sadd.s32 4294967295, %s1404_s29  }
  0x3a   : > { %p209_p9 = scmp.eq.s32.totalorder %s1784_s8, 1  ;;  %s1794_s23 = smov (%p43_p10, %s41_s23), 0 }
  0x3b   : > { %p1084_p0 = scmp.lt.s32.totalorder %s1404_s29, 2  ;;  %s45_s21 = ssub.s32 %s1400_s28, %s1794_s23 }
  0x3c   : > { %p1587_p8 = por %p209_p9, %p57_p12  ;;  %s314_s22 = sand.u32 1, %s1392_s26  }
  0x3d   : > { %p48_p2 = scmp.eq.s32.totalorder %s45_s21, 0  ;;  %p59_p3 = por %p58_p13, %p57_p12 }
  0x3e   : > { %s1011_s11 = sshll.u32 %s314_s22, 2  ;;  %s1012_s15 = sshll.u32 %s1400_s28, 2 }
  0x3f   : > { %s1597_s17 = scalar_select %p48_p2, %s1392_s26, %s50_s30  }
  0x40   : > { %s323_s14 = scalar_lea.hbm %s1761_s0, %s1012_s15  ;;  %s318_s20 = scalar_lea.vmem [#allocation2], %s1011_s11 }
  0x41   : > { %s325_s1 = sshll.u32 %s323_s14, 4  ;;  %s327_s8 = sshll.u32 %s318_s20, 4  ;;  %s326_s1 = int_to_ptr.hbm [resolvable:$true] %s325_s1  ;;  %s328_s8 = int_to_ptr.vmem [resolvable:$true] %s327_s8 }
  0x42   : > { %p1073_p5 = pnand %p1084_p0, %p59_p3  ;;  %s315_s2 = scalar_lea.sflag [#allocation3], %s314_s22 }
  0x43   : > { %342 = sbr.rel (%p1510_p7) target bundleno = 1301 (0x515), region = 44  ;;  %s1607_s30 = sand.u32 (!%p1510_p7), 1, %s1388_s25  }
  0x44   : > { %1075 = dma.hbm_to_vmem [thread:$0]  (!%p1073_p5), %s326_s1, 64, %s328_s8, %s315_s2  }
  0x45   : > { %s1014_s21 = sshll.u32 (!%p1510_p7), %s1607_s30, 2  ;;  %s345_s15 = scalar_lea.sflag (!%p1510_p7), [#allocation3], %s1607_s30 }
  0x46   : > { %s348_s19 = scalar_lea.vmem (!%p1510_p7), [#allocation2], %s1014_s21 }
  0x48   : > { %1363 = dma.done.wait (%p1498_p4), %s345_s15, 64  }
  0x49   : > { %1365 = vsyncadd (%p1498_p4), %s345_s15, 4294967232 }
  0x4a   : > { %1367 = dma.done.wait (%p1498_p4), [#allocation6], 256  }
  0x4b   : > { %1369 = vsyncadd (%p1498_p4), [#allocation6], 4294967040 }
  0x4c   : > { %1371 = dma.done.wait (%p1491_p1), [#allocation9], 256  }
  0x4d   : > { %1373 = vsyncadd (%p1491_p1), [#allocation9], 4294967040  ;;  %p403_p7 = scmp.lt.s32.totalorder %s1396_s27, 1  ;;  %vm434_vm0 = vcmask 64512   ;;  %v1625_v0 = vld [vmem:[#allocation5] sm:$0xff]  ;;  %s1411_s10 = smov 120   ;;  %v414_v5 = vlaneseq }
  0x4e   : > { %v407_v1 = vld [vmem:[%s348_s19] sm:$0xf]  ;;  %510 = vrot.lane.b32.xlu0 %v1625_v0, %s1411_s10  ;;  %v439_v2 = vsel %vm434_vm0, %v1625_v0, 0  ;;  %v1412_v13 = vmov -1e+30   ;;  %vm454_vm4 = vcmask 130048   ;;  %s841_s20 = scalar_lea.hbm %s1768_s7, %s1508_s12 }
  0x4f   : > { %s1796_s27 = smov (!%p403_p7, %s1396_s27), 1  ;;  %v506_v3 = vunpack.c.l.b16 %v407_v1  ;;  %448 = vmatpush.bf16.xpose.msra.mxu0 %v439_v2  ;;  %v415_v6 = vshrl.u32 %v414_v5, 7  ;;  %v419_v9 = vand.u32 127, %v414_v5  ;;  %v1647_v29 = vld [vmem:[#allocation7] sm:$0xff]  ;;  %s1414_s9 = smov 112   ;;  %vm582_vm9 = vcmask 1043456  }
  0x50   : > { %s405_s22 = scalar_lea.vmem %s1766_s5, %s1796_s27  ;;  %s1413_s27 = smov 104   ;;  %497 = vmatpush.bf16.msra.mxu1 %v1647_v29  ;;  %v504_v49 = vld [vmem:[#allocation8] sm:$0xf] }
  0x51   : > { %v507_v4 = vpack.c.b16 %v506_v3, %v506_v3  ;;  %v420_v10 = vadd.s32 8, %v415_v6  ;;  %vm422_vm2 = vcmp.lt.s32.totalorder %v419_v9, %v415_v6  ;;  %v1144_v12 = vld [vmem:[%s405_s22] ss:$0 sm:$0xff]  ;;  %v603_v50 = vsel %vm582_vm9, %v504_v49, 0  ;;  %s1016_s11 = sshll.u32 %s1607_s30, 3  ;;  %s845_s21 = sshll.u32 %s841_s20, 4  ;;  %s846_s21 = int_to_ptr.hbm [resolvable:$true] %s845_s21 }
  0x52   : > { %s402_s16 = scalar_lea.vmem [#allocation11], %s1016_s11  ;;  %s815_s15 = scalar_lea.sflag [#allocation12], %s1607_s30 }
  0x53   : > { %vm421_vm1 = vcmp.gt.s32.totalorder %v419_v9, %v420_v10  ;;  %v578_v9 = vld [vmem:[#allocation8 + $0x4] sm:$0xf]  ;;  %s843_s8 = sshll.u32 %s402_s16, 4  ;;  %s1296_s19 = sshra.s32 %s846_s21, 4  ;;  %s844_s8 = int_to_ptr.vmem [resolvable:$true] %s843_s8  ;;  %s1297_s19 = int_to_ptr.hbm [resolvable:$true] %s1296_s19 }
  0x54   : > { %vm423_vm3 = vmor %vm421_vm1, %vm422_vm2  ;;  %v584_v10 = vsel %vm582_vm9, %v578_v9, 0  ;;  %s1298_s2 = scalar_lea.hbm %s1297_s19, 8  ;;  %p1303_p10 = scmp.lt.s32.totalorder %s1297_s19, %s1768_s7 }
  0x55   : > { %v424_v14 = vsel %vm423_vm3, 0.0, %v1412_v13  ;;  %593 = vmatpush.bf16.msrb.mxu1 %v584_v10  ;;  %p1299_p1 = scmp.ne.s32.totalorder %s1297_s19, %s1298_s2 }
  0x56   : > { %508 = vrot.lane.b32.xlu0 %v507_v4, %s1411_s10  ;;  %1022 = vmatmul.msk.bf16.vlgmr.msra.gmra.mxu0 %vm434_vm0, %v407_v1  ;;  %v1638_v15 = vadd.f32 %v1144_v12, %v424_v14 }
  0x57   : > { %p1300_p4 = pnand %p1299_p1, %p1587_p8 }
  0x59   : > { %p1301_p11 = pneg %p1300_p4 }
  0x5e   : > { %558 = vrot.lane.b32.xlu0 %v1647_v29, %s1411_s10  ;;  %s1302_s10 = scalar_lea.hbm %s1768_s7, 16 }
  0x5f   : > { %p1304_p12 = scmp.lt.s32.totalorder %s1302_s10, %s1298_s2 }
  0x61   : > { %p1305_p13 = por %p1304_p12, %p1303_p10 }
  0x63   : > { %p1306_p9 = pnand %p1305_p13, %p1301_p11 }
  0x66   : > { %709 = vrot.lane.b32.xlu0 %v507_v4, %s1413_s27 }
  0x6e   : > { %618 = vrot.lane.b32.xlu0 %v507_v4, %s1414_s9 }
  0xc0   : > { %v511_v7 = vpop.permute.xlu0 %510 }
  0xc1   : > { %v516_v8 = vsel %vm434_vm0, %v511_v7, 0 }
  0xc2   : > { %525 = vmatpush.bf16.xpose.msra.mxu2 %v516_v8 }
  0xc8   : > { %v509_v11 = vpop.permute.xlu0 %508 }
  0xc9   : > { %1028 = vmatmul.msk.bf16.vlgmr.msra.gmra.mxu2 %vm434_vm0, %v509_v11 }
  0xd0   : > { %v559_v48 = vpop.permute.xlu0 %558 }
  0xd1   : > { %571 = vmatpush.bf16.msra.mxu3 %v559_v48 }
  0xd3   : > { %v450_v16 = vpop.f32.mrf.mxu0 }
  0xd4   : > { %v451_v17 = vadd.f32 %v450_v16, %v1638_v15 }
  0xd5   : > { %612 = vmatpush.bf16.msrb.mxu3 %v603_v50 }
  0xd6   : > { %v455_v18 = vsel %vm454_vm4, %v451_v17, -inf }
  0xd7   : > { %456 = vmax.xlane.f32.xlu1 %v455_v18 }
  0xd8   : > { %v710_v52 = vpop.permute.xlu0 %709 }
  0xdb   : > { %v452_v19 = vpop.f32.mrf.mxu0 }
  0xe0   : > { %v619_v62 = vpop.permute.xlu0 %618 }
 0x14a   : > { %v457_v20 = vpop.xlane.xlu1 %456 }
 0x14b   : > { %v458_v21 = vsub.f32 %v451_v17, %v457_v20 }
 0x14c   : > { %v527_v22 = vpop.f32.mrf.mxu2 }
 0x14d   : > { %v459_v23 = vmul.f32 1.442695, %v458_v21  ;;  %v528_v24 = vadd.f32 %v527_v22, %v1638_v15 }
 0x14f   : > { %1146 = vpow2.f32 %v459_v23  ;;  %v531_v25 = vsel %vm454_vm4, %v528_v24, -inf }
 0x150   : > { %532 = vmax.xlane.f32.xlu2 %v531_v25 }
 0x154   : > { %v529_v26 = vpop.f32.mrf.mxu2 }
 0x155   : > { %v1147_v27 = vpop.eup %1146 }
 0x156   : > { %v461_v28 = vsel %vm454_vm4, %v1147_v27, 0.0 }
 0x157   : > { %462 = vadd.xlane.f32.xlu1 %v461_v28 }
 0x170   : > { %711 = vrot.lane.b32.xlu1 %v1625_v0, %s1413_s27 }
 0x1c3   : > { %v533_v30 = vpop.xlane.xlu2 %532 }
 0x1c4   : > { %v534_v31 = vsub.f32 %v528_v24, %v533_v30 }
 0x1c6   : > { %v535_v32 = vmul.f32 1.442695, %v534_v31 }
 0x1c8   : > { %1148 = vpow2.f32 %v535_v32 }
 0x1ca   : > { %v463_v33 = vpop.xlane.xlu1 %462 }
 0x1cb   : > { %1150 = vrcp.f32 %v463_v33  ;;  %v475_v39 = vand.u32 2147483648, %v463_v33  ;;  %v473_v41 = vand.u32 2147483647, %v463_v33  ;;  %vm469_vm6 = vweird.f32 %v463_v33 }
 0x1cd   : > { %v476_v43 = vor.u32 1.1754944e-38, %v475_v39  ;;  %vm474_vm8 = vcmp.eq.f32.partialorder %v473_v41, 8.507059e+37 }
 0x1ce   : > { %v1149_v34 = vpop.eup %1148 }
 0x1cf   : > { %v537_v35 = vsel %vm454_vm4, %v1149_v34, 0.0 }
 0x1d0   : > { %538 = vadd.xlane.f32.xlu2 %v537_v35 }
 0x1d1   : > { %v1151_v36 = vpop.eup %1150 }
 0x1d2   : > { %v465_v37 = vmul.f32 %v1151_v36, %v463_v33  ;;  %vm470_vm5 = vweird.f32 %v1151_v36 }
 0x1d3   : > { %vm471_vm7 = vmor %vm469_vm6, %vm470_vm5 }
 0x1d4   : > { %v466_v38 = vsub.f32 1.0, %v465_v37 }
 0x1d6   : > { %v467_v40 = vmul.f32 %v1151_v36, %v466_v38 }
 0x1d8   : > { %v468_v42 = vadd.f32 %v1151_v36, %v467_v40 }
 0x1da   : > { %v472_v44 = vsel %vm471_vm7, %v1151_v36, %v468_v42 }
 0x1db   : > { %v477_v45 = vsel %vm474_vm8, %v476_v43, %v472_v44 }
 0x1dc   : > { %v1655_v46 = vmul.f32 %v1147_v27, %v477_v45 }
 0x1de   : > { %v480_v47 = vpack.c.bf16 %v1655_v46, %v1655_v46 }
 0x1e0   : > { %1027 = vmatmul.msk.bf16.vlgmr.msra.gmra.mxu1 %vm454_vm4, %v480_v47 }
 0x1e2   : > { %v712_v2 = vpop.permute.xlu1 %711 }
 0x1e3   : > { %v717_v5 = vsel %vm434_vm0, %v712_v2, 0 }
 0x1e8   : > { %620 = vrot.lane.b32.xlu2 %v1625_v0, %s1414_s9 }
 0x243   : > { %v539_v51 = vpop.xlane.xlu2 %538 }
 0x244   : > { %1152 = vrcp.f32 %v539_v51  ;;  %v551_v58 = vand.u32 2147483648, %v539_v51  ;;  %v549_v60 = vand.u32 2147483647, %v539_v51  ;;  %vm545_vm11 = vweird.f32 %v539_v51 }
 0x246   : > { %v552_v63 = vor.u32 1.1754944e-38, %v551_v58  ;;  %vm550_vm13 = vcmp.eq.f32.partialorder %v549_v60, 8.507059e+37 }
 0x24a   : > { %v1153_v53 = vpop.eup %1152 }
 0x24b   : > { %v541_v54 = vmul.f32 %v1153_v53, %v539_v51  ;;  %v621_v55 = vpop.permute.xlu2 %620  ;;  %vm546_vm10 = vweird.f32 %v1153_v53 }
 0x24c   : > { %v626_v56 = vsel %vm434_vm0, %v621_v55, 0  ;;  %vm547_vm12 = vmor %vm545_vm11, %vm546_vm10 }
 0x24d   : > { %v542_v57 = vsub.f32 1.0, %v541_v54  ;;  %635 = vmatpush.bf16.xpose.msrb.mxu0 %v626_v56 }
 0x24f   : > { %v543_v59 = vmul.f32 %v1153_v53, %v542_v57 }
 0x251   : > { %v544_v61 = vadd.f32 %v1153_v53, %v543_v59 }
 0x253   : > { %v548_v0 = vsel %vm547_vm12, %v1153_v53, %v544_v61 }
 0x254   : > { %1032 = vmatmul.msk.bf16.vlgmr.msrb.gmra.mxu0 %vm434_vm0, %v619_v62  ;;  %v553_v1 = vsel %vm550_vm13, %v552_v63, %v548_v0 }
 0x255   : > { %v1665_v3 = vmul.f32 %v1149_v34, %v553_v1 }
 0x257   : > { %v557_v4 = vpack.c.bf16 %v1665_v3, %v1665_v3  ;;  %v556_v61 = vadd.f32 %v1665_v3, %v1655_v46  ;;  %v779_v46 = vld [vmem:[#allocation8 + $0xc] sm:$0xf] }
 0x258   : > { %v784_v3 = vsel %vm582_vm9, %v779_v46, 0 }
 0x259   : > { %1029 = vmatmul.msk.bf16.vlgmr.msra.gmra.mxu3 %vm454_vm4, %v557_v4 }
 0x25a   : > { %726 = vmatpush.bf16.xpose.msra.mxu3 %v717_v5 }
 0x25d   : > { %v499_v6 = vpop.f32.mrf.mxu1 }
 0x25e   : > { %v503_v8 = vpack.c.bf16 %v499_v6, %v499_v6  ;;  %v688_v6 = vld [vmem:[#allocation8 + $0x8] sm:$0xf] }
 0x265   : > { %v501_v7 = vpop.f32.mrf.mxu1 }
 0x266   : > { %v693_v7 = vsel %vm582_vm9, %v688_v6, 0 }
 0x267   : > { %702 = vmatpush.bf16.msra.mxu1 %v693_v7 }
 0x269   : > { %1031 = vmatmul.msk.bf16.vlgmr.msrb.gmra.mxu3 %vm434_vm0, %v503_v8 }
 0x279   : > { %1035 = vmatmul.msk.bf16.vlgmr.msra.gmra.mxu3 %vm434_vm0, %v710_v52 }
 0x2d1   : > { %v637_v11 = vpop.f32.mrf.mxu0 }
 0x2d2   : > { %v638_v12 = vadd.f32 %v637_v11, %v1638_v15 }
 0x2d4   : > { %v641_v13 = vsel %vm454_vm4, %v638_v12, -inf }
 0x2d5   : > { %642 = vmax.xlane.f32.xlu0 %v641_v13 }
 0x2d9   : > { %v639_v14 = vpop.f32.mrf.mxu0 }
 0x2dc   : > { %v573_v16 = vpop.f32.mrf.mxu3 }
 0x2dd   : > { %v577_v17 = vpack.c.bf16 %v573_v16, %v573_v16 }
 0x2df   : > { %1030 = vmatmul.msk.bf16.vlgmr.msrb.gmra.mxu1 %vm434_vm0, %v577_v17 }
 0x2e4   : > { %v575_v18 = vpop.f32.mrf.mxu3 }
 0x2e9   : > { %668 = vrot.lane.b32.xlu0 %v1647_v29, %s1414_s9 }
 0x2ec   : > { %v1679_v19 = vpop.f32.mrf.mxu3 }
 0x2f4   : > { %v616_v20 = vpop.f32.mrf.mxu3 }
 0x2fc   : > { %v728_v21 = vpop.f32.mrf.mxu3 }
 0x2fd   : > { %v729_v22 = vadd.f32 %v728_v21, %v1638_v15 }
 0x2ff   : > { %v732_v23 = vsel %vm454_vm4, %v729_v22, -inf }
 0x300   : > { %733 = vmax.xlane.f32.xlu2 %v732_v23 }
 0x304   : > { %v730_v24 = vpop.f32.mrf.mxu3 }
 0x348   : > { %v643_v25 = vpop.xlane.xlu0 %642 }
 0x349   : > { %v644_v26 = vsub.f32 %v638_v12, %v643_v25 }
 0x34b   : > { %v645_v27 = vmul.f32 1.442695, %v644_v26 }
 0x34d   : > { %1154 = vpow2.f32 %v645_v27 }
 0x353   : > { %v1155_v28 = vpop.eup %1154 }
 0x354   : > { %v647_v30 = vsel %vm454_vm4, %v1155_v28, 0.0 }
 0x355   : > { %648 = vadd.xlane.f32.xlu1 %v647_v30 }
 0x35b   : > { %v669_v37 = vpop.permute.xlu0 %668 }
 0x35c   : > { %v1684_v31 = vpop.f32.mrf.mxu1  ;;  %681 = vmatpush.bf16.msrb.mxu2 %v669_v37 }
 0x360   : > { %793 = vmatpush.bf16.msra.mxu2 %v784_v3 }
 0x364   : > { %v597_v32 = vpop.f32.mrf.mxu1 }
 0x36e   : > { %759 = vrot.lane.b32.xlu1 %v1647_v29, %s1413_s27 }
 0x373   : > { %v734_v33 = vpop.xlane.xlu2 %733 }
 0x374   : > { %v735_v15 = vsub.f32 %v729_v22, %v734_v33 }
 0x376   : > { %v736_v34 = vmul.f32 1.442695, %v735_v15 }
 0x378   : > { %1156 = vpow2.f32 %v736_v34 }
 0x37e   : > { %v1157_v35 = vpop.eup %1156 }
 0x37f   : > { %v738_v36 = vsel %vm454_vm4, %v1157_v35, 0.0 }
 0x380   : > { %739 = vadd.xlane.f32.xlu2 %v738_v36 }
 0x3c8   : > { %v649_v38 = vpop.xlane.xlu1 %648 }
 0x3c9   : > { %1158 = vrcp.f32 %v649_v38  ;;  %v661_v42 = vand.u32 2147483648, %v649_v38  ;;  %v659_v44 = vand.u32 2147483647, %v649_v38  ;;  %vm655_vm15 = vweird.f32 %v649_v38 }
 0x3cb   : > { %v662_v45 = vor.u32 1.1754944e-38, %v661_v42  ;;  %vm660_vm2 = vcmp.eq.f32.partialorder %v659_v44, 8.507059e+37 }
 0x3cf   : > { %v1159_v39 = vpop.eup %1158 }
 0x3d0   : > { %v651_v40 = vmul.f32 %v1159_v39, %v649_v38  ;;  %vm656_vm14 = vweird.f32 %v1159_v39 }
 0x3d1   : > { %vm657_vm1 = vmor %vm655_vm15, %vm656_vm14 }
 0x3d2   : > { %v652_v41 = vsub.f32 1.0, %v651_v40 }
 0x3d4   : > { %v653_v43 = vmul.f32 %v1159_v39, %v652_v41 }
 0x3d6   : > { %v654_v29 = vadd.f32 %v1159_v39, %v653_v43 }
 0x3d8   : > { %v658_v47 = vsel %vm657_vm1, %v1159_v39, %v654_v29 }
 0x3d9   : > { %v663_v48 = vsel %vm660_vm2, %v662_v45, %v658_v47 }
 0x3da   : > { %v665_v49 = vmul.f32 %v1155_v28, %v663_v48 }
 0x3dc   : > { %v667_v50 = vpack.c.bf16 %v665_v49, %v665_v49  ;;  %v666_v0 = vadd.f32 %v665_v49, %v556_v61 }
 0x3de   : > { %1033 = vmatmul.msk.bf16.vlgmr.msrb.gmra.mxu2 %vm454_vm4, %v667_v50 }
 0x3e0   : > { %v760_v51 = vpop.permute.xlu1 %759 }
 0x3e1   : > { %772 = vmatpush.bf16.msra.mxu0 %v760_v51 }
 0x3f3   : > { %v740_v52 = vpop.xlane.xlu2 %739 }
 0x3f4   : > { %1160 = vrcp.f32 %v740_v52  ;;  %v752_v56 = vand.u32 2147483648, %v740_v52  ;;  %v750_v58 = vand.u32 2147483647, %v740_v52  ;;  %vm746_vm5 = vweird.f32 %v740_v52 }
 0x3f6   : > { %v753_v60 = vor.u32 1.1754944e-38, %v752_v56  ;;  %vm751_vm7 = vcmp.eq.f32.partialorder %v750_v58, 8.507059e+37 }
 0x3fa   : > { %v1161_v53 = vpop.eup %1160 }
 0x3fb   : > { %v742_v54 = vmul.f32 %v1161_v53, %v740_v52  ;;  %vm747_vm3 = vweird.f32 %v1161_v53 }
 0x3fc   : > { %vm748_vm6 = vmor %vm746_vm5, %vm747_vm3 }
 0x3fd   : > { %v743_v55 = vsub.f32 1.0, %v742_v54 }
 0x3ff   : > { %v744_v57 = vmul.f32 %v1161_v53, %v743_v55 }
 0x401   : > { %v745_v59 = vadd.f32 %v1161_v53, %v744_v57 }
 0x403   : > { %v749_v62 = vsel %vm748_vm6, %v1161_v53, %v745_v59 }
 0x404   : > { %v754_v63 = vsel %vm751_vm7, %v753_v60, %v749_v62 }
 0x405   : > { %v756_v1 = vmul.f32 %v1157_v35, %v754_v63 }
 0x407   : > { %v757_v2 = vadd.f32 %v756_v1, %v666_v0  ;;  %v758_v4 = vpack.c.bf16 %v756_v1, %v756_v1 }
 0x409   : > { %v807_v5 = vmul.f32 0.25, %v757_v2  ;;  %1036 = vmatmul.msk.bf16.vlgmr.msra.gmra.mxu0 %vm454_vm4, %v758_v4 }
 0x40b   : > { %808 = vst.msk [vmem:[%s402_s16] sm:$0xff] %vm454_vm4, %v807_v5 }
 0x461   : > { %v683_v8 = vpop.f32.mrf.mxu2 }
 0x462   : > { %v687_v9 = vpack.c.bf16 %v683_v8, %v683_v8 }
 0x464   : > { %1034 = vmatmul.msk.bf16.vlgmr.msra.gmra.mxu1 %vm434_vm0, %v687_v9 }
 0x469   : > { %v685_v10 = vpop.f32.mrf.mxu2 }
 0x486   : > { %v774_v11 = vpop.f32.mrf.mxu0 }
 0x487   : > { %v778_v12 = vpack.c.bf16 %v774_v11, %v774_v11 }
 0x489   : > { %1037 = vmatmul.msk.bf16.vlgmr.msra.gmra.mxu2 %vm434_vm0, %v778_v12 }
 0x48e   : > { %v776_v13 = vpop.f32.mrf.mxu0 }
 0x48f   : > { %1309 = shalt.err (!%p1306_p9)
}
 0x490   : > { %1059 = dma.vmem_to_hbm [thread:$0]  (%p1587_p8), %s844_s8, 128, %s846_s21, %s815_s15   ;;  %v615_v17 = vadd.f32 %v1679_v19, %v1684_v31  ;;  %v1145_v20 = vld [vmem:[%s1765_s4] ss:$0 sm:$0xff]  ;;  %vm805_vm0 = vcmask 261120  }
 0x491   : > { %s826_s1 = scalar_lea.hbm %s1767_s6, %s1508_s12  ;;  %s395_s2 = scalar_lea.vmem [#allocation10], %s1016_s11 }
 0x492   : > { %s828_s8 = sshll.u32 %s395_s2, 4  ;;  %s830_s21 = sshll.u32 %s826_s1, 4  ;;  %s829_s8 = int_to_ptr.vmem [resolvable:$true] %s828_s8  ;;  %s831_s21 = int_to_ptr.hbm [resolvable:$true] %s830_s21 }
 0x493   : > { %s810_s15 = scalar_lea.sflag [#allocation4], %s1607_s30  ;;  %s1324_s13 = sshra.s32 %s831_s21, 4  ;;  %s1325_s13 = int_to_ptr.hbm [resolvable:$true] %s1324_s13 }
 0x494   : > { %s1326_s12 = scalar_lea.hbm %s1325_s13, 8  ;;  %s1330_s11 = scalar_lea.hbm %s1767_s6, 16 }
 0x495   : > { %p1327_p0 = scmp.ne.s32.totalorder %s1325_s13, %s1326_s12  ;;  %p1331_p5 = scmp.lt.s32.totalorder %s1325_s13, %s1767_s6 }
 0x496   : > { %p1332_p7 = scmp.lt.s32.totalorder %s1330_s11, %s1326_s12 }
 0x497   : > { %p1328_p2 = pnand %p1327_p0, %p1587_p8 }
 0x498   : > { %p1333_p1 = por %p1332_p7, %p1331_p5 }
 0x499   : > { %p1329_p3 = pneg %p1328_p2 }
 0x49b   : > { %p1334_p4 = pnand %p1333_p1, %p1329_p3 }
 0x4e1   : > { %v704_v14 = vpop.f32.mrf.mxu1 }
 0x4e2   : > { %v708_v18 = vadd.f32 %v704_v14, %v615_v17 }
 0x4e9   : > { %v706_v16 = vpop.f32.mrf.mxu1 }
 0x50c   : > { %v795_v21 = vpop.f32.mrf.mxu2 }
 0x50d   : > { %v799_v22 = vadd.f32 %v795_v21, %v708_v18 }
 0x50f   : > { %v804_v23 = vadd.f32 %v1145_v20, %v799_v22 }
 0x511   : > { %806 = vst.msk [vmem:[%s395_s2] sm:$0xff] %vm805_vm0, %v804_v23 }
 0x512   : > { %1337 = shalt.err (!%p1334_p4)
}
 0x513   : > { %1058 = dma.vmem_to_hbm [thread:$0]  (%p1587_p8), %s829_s8, 128, %s831_s21, %s810_s15  }
 0x514   : > { %v797_v19 = vpop.f32.mrf.mxu2 }
 0x515 PF: > { %s857_s16 = sand.u32 1, %s1384_s24   ;;  %p1787_p11 = scmp.ge.s32.totalorder %s1404_s29, 2 }
 0x516   : > { %s858_s14 = scalar_lea.sflag [#allocation4], %s857_s16 }
 0x517   : > { %p1077_p10 = pnand %p1787_p11, %p1503_p6 }
 0x519   : > { %p1078_p12 = pneg %p1077_p10 }
 0x51b   : > { %1375 = dma.done.wait (%p1078_p12), %s858_s14, 128  }
 0x51c   : > { %1377 = vsyncadd (%p1078_p12), %s858_s14, 4294967168  ;;  %s868_s1 = scalar_lea.sflag [#allocation12], %s857_s16 }
 0x51d   : > { %1379 = dma.done.wait (%p1078_p12), %s868_s1, 128  }
 0x51e   : > { %1381 = vsyncadd (%p1078_p12), %s868_s1, 4294967168  ;;  %s29_s29 = sadd.s32 1, %s1404_s29   ;;  %s1788_s24 = smov %s1388_s25 }
 0x51f   : > { %p26_p13 = scmp.ge.s32.totalorder %s29_s29, 4   ;;  %s1789_s25 = smov %s1392_s26 }
 0x520   : > { %s1790_s26 = smov %s1597_s17  ;;  %s1791_s27 = smov %s1400_s28 }
 0x521   : > { %s1792_s28 = smov %s1794_s23  ;;  %28 = sbr.rel (!%p26_p13) target bundleno = 13 (0xd), region = 123 }
 0x526   :  { %874 = vsyncpa [#allocation3], 1 }
 0x527   :  { %876 = vsyncpa [#allocation3 + $0x1], 1 }
 0x528   :  { %877 = vsyncpa [#allocation6], 1 }
 0x529   :  { %878 = vsyncpa [#allocation9], 1 }
 0x52a   :  { %879 = vsyncpa [#allocation4], 1 }
 0x52b   :  { %881 = vsyncpa [#allocation4 + $0x1], 1 }
 0x52c   :  { %882 = vsyncpa [#allocation12], 1 }
 0x52d   :  { %884 = vsyncpa [#allocation12 + $0x1], 1 }

</bundles_post_ra>
